<compile_context>
chip_gen: v7x
topology: tpu7x:2x2x1
jax: 0.10.0
libtpu: 0.0.40
codegen_flags: <defaults>
</compile_context>

<pallas_src>
from math import cos, sin, radians, ceil

import numpy as np
import jax
import jax.numpy as jnp
from jax.experimental import pallas as pl
from jax.experimental.pallas import tpu as pltpu


# ---------------------------------------------------------------------------
# Host-side (glue) pixel grouping — pure Python, same semantics as the module.
# ---------------------------------------------------------------------------
def _det(ux, uy, vx, vy):
    return ux * vy - uy * vx


def group_pixels(mask_shape, n_rays, angle_ray=None, white_pixel_ratio=True):
    if white_pixel_ratio:
        angle_ray = 360.0 / (4 * n_rays)
    xc = mask_shape[0] // 2
    yc = mask_shape[1] // 2
    angle_center = 360.0 / n_rays
    alphas = [i * angle_center % 360 for i in range(n_rays)]
    ray_side_height = mask_shape[0] + mask_shape[1]
    triangles = []
    for alpha in alphas:
        x1 = ray_side_height * cos(radians(alpha) + radians(angle_ray))
        y1 = ray_side_height * sin(radians(alpha) + radians(angle_ray))
        x2 = ray_side_height * cos(radians(alpha) - radians(angle_ray))
        y2 = ray_side_height * sin(radians(alpha) - radians(angle_ray))
        triangles.append([(0, 0), (x1, y1), (x2, y2)])
    pixel_groups = {i: [] for i in range(len(triangles))}
    for x in range(mask_shape[0]):
        for y in range(mask_shape[1]):
            for idx, tri in enumerate(triangles):
                d = _det(tri[1][0], tri[1][1], tri[2][0], tri[2][1])
                a = (_det(x - xc, y - yc, tri[2][0], tri[2][1])
                     - _det(tri[0][0], tri[0][1], tri[2][0], tri[2][1])) / d
                b = -(_det(x - xc, y - yc, tri[1][0], tri[1][1])
                      - _det(tri[0][0], tri[0][1], tri[1][0], tri[1][1])) / d
                if a > 0 and b > 0 and (a + b < 1):
                    pixel_groups[idx].append((x, y))
                    break
    return pixel_groups


# ---------------------------------------------------------------------------
# Pallas kernel: one lane-dense matmul  out = X @ K  (bf16 operands, f32 acc).
# ---------------------------------------------------------------------------
def _mask_matmul_kernel(x_ref, k_ref, o_ref):
    o_ref[...] = jnp.dot(x_ref[...], k_ref[...],
                         preferred_element_type=jnp.float32)


def _apply_mask_matrix(x_flat, k_mat, *, tn=128):
    """x_flat: (N, D) bf16, k_mat: (D, Dout) bf16 -> (N, Dout) f32."""
    N, D = x_flat.shape
    Din, Dout = k_mat.shape
    assert D == Din
    grid = (pl.cdiv(Dout, tn),)
    return pl.pallas_call(
        _mask_matmul_kernel,
        out_shape=jax.ShapeDtypeStruct((N, Dout), jnp.float32),
        grid_spec=pltpu.PrefetchScalarGridSpec(
            num_scalar_prefetch=0,
            grid=grid,
            in_specs=[
                pl.BlockSpec((N, Din), lambda j: (0, 0)),   # whole batch, tiny (few KiB)
                pl.BlockSpec((Din, tn), lambda j: (0, j)),  # 128-wide column tile of K
            ],
            out_specs=pl.BlockSpec((N, tn), lambda j: (0, j)),  # lane-dense (128) stores
        ),
        compiler_params=pltpu.CompilerParams(
            dimension_semantics=("parallel",)),  # 2 independent tiles -> both v7x TCs
    )(x_flat, k_mat)


# ---------------------------------------------------------------------------
# Module wrapper.
# ---------------------------------------------------------------------------
class GroupPixelMaskPallas:
    def __init__(self, img_shape, sigma=1.0, img_reso=(16, 16), param_key=None):
        self.img_reso = img_reso
        self.input_shape = img_shape
        self.sigma = sigma
        self.kernel_size = 2 * ceil(2 * sigma) + 1
        self.pixel_map = group_pixels(img_shape, angle_ray=2.6, n_rays=70,
                                      white_pixel_ratio=False)
        n_groups = len(self.pixel_map)
        if param_key is None:
            param_key = jax.random.PRNGKey(0)
        # deterministic stand-in for np.random.uniform(0.4, 0.6, [n_groups])
        self.pixel_val = jax.random.uniform(param_key, (n_groups,),
                                            minval=0.4, maxval=0.6,
                                            dtype=jnp.float32)

        H, W = img_reso
        self.P = H + 2 * (H // 2)
        self.Q = W + 2 * (W // 2)

        # Host-side precompute: blurred mask and the folded conv matrix K.
        # (pixel_val is a fixed parameter, so the filter — and hence K — is fixed;
        #  forward-pass semantics are unchanged.)
        self._blurred_mask = self._blur_np(self._create_mask_np())
        self._K = self._build_conv_matrix(self._blurred_mask)        # (H*W, H*W) f64
        self._K_bf16 = jnp.asarray(self._K, jnp.bfloat16)

    # --- host-side mask construction (matches module create_mask) -------------
    def _create_mask_np(self):
        H, W = self.input_shape[0], self.input_shape[1]
        mask = np.zeros((H, W), np.float64)
        pv = np.asarray(self.pixel_val, np.float64)
        for g, pts in self.pixel_map.items():
            for (x, y) in pts:
                mask[x, y] = pv[g]
        return mask

    # --- torchvision GaussianBlur semantics: separable gaussian, reflect pad ---
    def _blur_np(self, mask):
        ks, sigma = self.kernel_size, self.sigma
        half = (ks - 1) * 0.5
        xs = np.linspace(-half, half, ks)
        pdf = np.exp(-0.5 * (xs / sigma) ** 2)
        k1d = pdf / pdf.sum()
        k2d = np.outer(k1d, k1d)
        pad = ks // 2
        m = np.pad(mask, pad, mode="reflect")
        H, W = mask.shape
        out = np.zeros((H, W), np.float64)
        for i in range(ks):
            for j in range(ks):
                out += k2d[i, j] * m[i:i + H, j:j + W]
        return out

    # --- fold pad->fft2->fftshift->(*M)->ifft2->ifftshift->real->crop into K ---
    def _build_conv_matrix(self, blurred_mask):
        H, W = self.img_reso
        ph, pw = H // 2, W // 2
        P, Q = self.P, self.Q
        m = np.zeros((P, Q), np.float64)
        m[ph:ph + H, pw:pw + W] = blurred_mask
        m_norm = m / m.sum()
        M_F = np.fft.fftshift(np.fft.fft2(m_norm))
        # Delta basis of the H*W real input pixels, zero-padded in place.
        n = H * W
        idx = np.arange(n)
        E = np.zeros((n, P, Q), np.float64)
        E[idx, idx // W + ph, idx % W + pw] = 1.0
        E_F = np.fft.fftshift(np.fft.fft2(E), axes=(-2, -1))
        conv = np.real(np.fft.ifftshift(np.fft.ifft2(E_F * M_F), axes=(-2, -1)))
        crop = conv[:, ph + 1:ph + 1 + H, pw + 1:pw + 1 + W]
        # K[j, i] = response of output pixel i to input delta j  =>  out = X_flat @ K
        return crop.reshape(n, n)

    # --- forward: one Pallas matmul on the flattened batch ---------------------
    def forward(self, batch):
        B, C, H, W = batch.shape
        assert (H, W) == tuple(self.img_reso)
        x = batch.reshape(B * C, H * W).astype(jnp.bfloat16)
        out = _apply_mask_matrix(x, self._K_bf16)       # (B*C, H*W) f32
        return out.reshape(B, C, H, W)

    # --- pure-JAX reference (mirrors the torch forward exactly) ----------------
    def reference_forward(self, batch):
        H, W = self.img_reso
        ph, pw = H // 2, W // 2
        mask = jnp.asarray(self._blurred_mask, jnp.float32)
        b = jnp.pad(batch.astype(jnp.float32), ((0, 0), (0, 0), (ph, ph), (pw, pw)))
        m = jnp.pad(mask, ((ph, ph), (pw, pw)))
        b_F = jnp.fft.fftshift(jnp.fft.fft2(b))       # axis-less shift, like torch
        m_F = jnp.fft.fftshift(jnp.fft.fft2(m / jnp.sum(m)))
        conv = jnp.real(jnp.fft.ifftshift(jnp.fft.ifft2(b_F * m_F)))
        return conv[:, :, ph + 1:ph + 1 + H, pw + 1:pw + 1 + W]


if __name__ == "__main__":
    key = jax.random.PRNGKey(0)
    k_batch, k_param = jax.random.split(key)

    B, C, H, W = 2, 4, 16, 16
    img_shape = (H, W, 3)
    img_reso = (H, W)

    batch = jax.random.normal(k_batch, (B, C, H, W), dtype=jnp.float32)

    module = GroupPixelMaskPallas(img_shape, sigma=1.0, img_reso=img_reso,
                                  param_key=k_param)
    out = jax.block_until_ready(module.forward(batch))

    ref = jax.block_until_ready(module.reference_forward(batch))
    np.testing.assert_allclose(np.asarray(out), np.asarray(ref), atol=1e-2, rtol=1e-2)

    print("KERNEL_OK")
</pallas_src>

<mosaic_0001>
module attributes {stable_mosaic.version = 11 : i64} {
  func.func @_mask_matmul_kernel(%arg0: i32, %arg1: memref<8x256xbf16, #tpu.memory_space<vmem>>, %arg2: memref<256x128xbf16, #tpu.memory_space<vmem>>, %arg3: memref<8x128xf32, #tpu.memory_space<vmem>>) attributes {dimension_semantics = [#tpu.dimension_semantics<parallel>], iteration_bounds = array<i64: 2>, scalar_prefetch = 0 : i64, scratch_operands = 0 : i64, tpu.core_type = #tpu.core_type<tc>, window_params = [{pipeline_mode = #tpu.pipeline_mode<synchronous>, transform_indices = @transform_0, window_bounds = array<i64: 8, 256>}, {transform_indices = @transform_1, window_bounds = array<i64: 256, 128>}, {transform_indices = @transform_2, window_bounds = array<i64: 8, 128>}]} {
    %c0 = arith.constant 0 : index
    %c0_0 = arith.constant 0 : index
    %0 = vector.load %arg1[%c0, %c0_0] : memref<8x256xbf16, #tpu.memory_space<vmem>>, vector<8x256xbf16>
    %c0_1 = arith.constant 0 : index
    %c0_2 = arith.constant 0 : index
    %1 = vector.load %arg2[%c0_1, %c0_2] : memref<256x128xbf16, #tpu.memory_space<vmem>>, vector<256x128xbf16>
    %cst = arith.constant dense<0.000000e+00> : vector<8x128xf32>
    %2 = tpu.matmul %0, %1, %cst {dimension_numbers = #tpu.dot_dimension_numbers<[1], [0], [0], [1], [0, 0, 1, 1], [], []>} : vector<8x256xbf16>, vector<256x128xbf16>, vector<8x128xf32> -> vector<8x128xf32>
    %c0_3 = arith.constant 0 : index
    %c0_4 = arith.constant 0 : index
    %3 = vector.load %arg3[%c0_3, %c0_4] : memref<8x128xf32, #tpu.memory_space<vmem>>, vector<8x128xf32>
    tpu.vector_store %arg3[%c0_3, %c0_4], %2 {strides = array<i32>} : memref<8x128xf32, #tpu.memory_space<vmem>>, vector<8x128xf32>,
    return
  }
  func.func @transform_0(%arg0: i32) -> (i32, i32) {
    %c0_i32 = arith.constant 0 : i32
    %c0_i32_0 = arith.constant 0 : i32
    %c0_i32_1 = arith.constant 0 : i32
    return %c0_i32, %c0_i32_0 : i32, i32
  }
  func.func @transform_1(%arg0: i32) -> (i32, i32) {
    %c0_i32 = arith.constant 0 : i32
    %c0_i32_0 = arith.constant 0 : i32
    return %c0_i32, %arg0 : i32, i32
  }
  func.func @transform_2(%arg0: i32) -> (i32, i32) {
    %c0_i32 = arith.constant 0 : i32
    %c0_i32_0 = arith.constant 0 : i32
    return %c0_i32, %arg0 : i32, i32
  }
}

</mosaic_0001>

<bundles_post_ra>
// kernel: tpu_custom_call.1
= control target key start
LH: loop header
LB: loop body
LE: loop exit
PB: predicated region body
PF: predicated region fallthrough
CT: control target
= control target key end

     0   :  { %7 = vsyncpa [#allocation3], 0  ;;  %s946_s0 = inlined_call_operand.hbm [shape: bf16[8,256], index: 0, kind: input, shape index: {}]   ;;  %s947_s1 = inlined_call_operand.hbm [shape: bf16[256,256], index: 1, kind: input, shape index: {}]   ;;  %s948_s2 = inlined_call_operand.hbm [shape: f32[8,256], index: 2, kind: output, shape index: {}]  }
   0x1   :  { %8 = vsyncpa [#allocation6], 0 }
   0x2   :  { %10 = vsyncpa [#allocation6 + $0x1], 0 }
   0x3   :  { %11 = vsyncpa [#allocation4], 0 }
   0x4   :  { %13 = vsyncpa [#allocation4 + $0x1], 0  ;;  %s731_s9 = smov 0   ;;  %s733_s10 = smov 0  }
   0x5   :  { %s735_s11 = smov 0   ;;  %s737_s12 = smov 0  }
   0x6 LB: > { %s752_s13 = sadd.s32 4294967295, %s708_s12   ;;  %s448_s14 = sadd.s32 4294967294, %s708_s12   ;;  %s708_s12 = sphi %s737_s12, %s973_s12   ;;  %s704_s11 = sphi %s735_s11, %s972_s11   ;;  %s700_s10 = sphi %s733_s10, %s971_s10   ;;  %s696_s9 = sphi %s731_s9, %s970_s9  }
   0x7   : > { %s756_s15 = sadd.s32 1, %s708_s12   ;;  %s47_s16 = sadd.s32 1, %s704_s11 }
   0x8   : > { %s44_s17 = ssub.s32 %s708_s12, %s756_s15  ;;  %p54_p0 = scmp.ne.s32.totalorder %s704_s11, %s700_s10 }
   0x9   : > { %p45_p1 = scmp.eq.s32.totalorder %s44_s17, 0  ;;  %p55_p2 = scmp.eq.s32.totalorder %s708_s12, 0 }
   0xa   : > { %p60_p3 = scmp.ne.s32.totalorder %s700_s10, %s696_s9  ;;  %p949_p4 = scmp.eq.s32.totalorder %s752_s13, 0 }
   0xb   : > { %s768_s18 = scalar_select %p45_p1, %s704_s11, %s47_s16  }
   0xc   : > { %p770_p5 = por %p55_p2, %p54_p0  ;;  %p776_p6 = por %p949_p4, %p60_p3 }
   0xd   : > { %p84_p7 = scmp.eq.s32.totalorder %s752_s13, 1  ;;  %p90_p8 = scmp.eq.s32.totalorder %s448_s14, 1 }
   0xe   : > { %s955_s20 = scalar_select %p776_p6, 1, 0 }
   0xf   : > { %p449_p9 = scmp.ge.s32.totalorder %s708_s12, 1  ;;  %p97_p10 = scmp.lt.s32.totalorder %s708_s12, 3 }
  0x10   : > { %p783_p11 = por %p84_p7, %p54_p0  ;;  %p787_p12 = por %p90_p8, %p60_p3 }
  0x11   : > { %p791_p13 = pnand %p449_p9, %p97_p10  ;;  %s710_s24 = smov [#allocation2]  }
  0x12   : > { %s956_s21 = scalar_select %p783_p11, 1, 0 }
  0x13   : > { %s957_s22 = scalar_select %p787_p12, 1, 0 }
  0x14   : > { %s958_s23 = scalar_select %p791_p13, 1, 0 }
  0x15   : > { %p510_p2 = pneg %p791_p13  ;;  %s110_s25 = sshll.u32 %s710_s24, 4  ;;  %s111_s25 = int_to_ptr.vmem [resolvable:$true] %s110_s25 }
  0x16   : > { %p523_p4 = scmp.lt.s32.totalorder %s708_s12, 2  ;;  %p959_p0 = scmp.eq.s32.totalorder %s752_s13, 0 }
  0x17   : > { %s121_s27 = sand.u32 1, %s704_s11   ;;  %s580_s4 = scalar_lea.hbm %s946_s0, 128 }
  0x18   : > { %p801_p7 = pnand %p510_p2, %p959_p0  ;;  %p808_p3 = pnand %p523_p4, %p770_p5 }
  0x19   : > { %s452_s29 = sshll.u32 %s121_s27, 7  ;;  %p581_p8 = scmp.ne.s32.totalorder %s946_s0, %s580_s4 }
  0x1a   : > { %s961_s28 = scalar_select %p808_p3, 1, 0 }
  0x1b   : > { %p582_p9 = pneg %p801_p7  ;;  %p587_p4 = scmp.lt.u32.totalorder %s580_s4, %s946_s0 }
  0x1d   : > { %p583_p10 = pnand %p582_p9, %p581_p8 }
  0x1f   : > { %p584_p2 = pneg %p583_p10 }
  0x21   : > { %p589_p5 = pnand %p587_p4, %p584_p2 }
  0x23   : > { %592 = shalt.err (!%p589_p5)
}
  0x24   : > { %s593_s14 = scalar_lea.vmem %s111_s25, 128  ;;  %p601_p11 = scmp.lt.s32.totalorder %s111_s25, %s111_s25 }
  0x25   : > { %p594_p0 = scmp.ne.s32.totalorder %s111_s25, %s593_s14  ;;  %p602_p6 = scmp.lt.s32.totalorder %s593_s14, %s593_s14 }
  0x27   : > { %p596_p1 = pnand %p594_p0, %p582_p9  ;;  %p603_p13 = por %p602_p6, %p601_p11 }
  0x29   : > { %p597_p12 = pneg %p596_p1 }
  0x2b   : > { %p604_p3 = pnand %p603_p13, %p597_p12 }
  0x2d   : > { %607 = shalt.err (!%p604_p3)
}
  0x2e   : > { %513 = dma.hbm_to_vmem [thread:$0]  (!%p801_p7), %s946_s0, 128, %s111_s25, [#allocation3]  }
  0x2f   : > { %s453_s19 = sshll.u32 %s708_s12, 6  ;;  %s125_s24 = scalar_lea.vmem [#allocation5], %s452_s29 }
  0x30   : > { %s131_s30 = sshll.u32 %s125_s24, 4  ;;  %s832_s5 = scalar_lea.hbm %s947_s1, %s453_s19  ;;  %s834_s30 = int_to_ptr.vmem [resolvable:$true] %s131_s30 }
  0x31   : > { %s836_s26 = scalar_lea.sflag [#allocation6], %s121_s27  ;;  %s608_s6 = scalar_lea.hbm %s832_s5, 2048 }
  0x32   : > { %p609_p6 = scmp.ne.s32.totalorder %s832_s5, %s608_s6  ;;  %p962_p11 = scmp.ne.s32.totalorder %s961_s28, 0 }
  0x33   : > { %s613_s7 = scalar_lea.hbm %s947_s1, 4096  ;;  %p614_p7 = scmp.lt.u32.totalorder %s832_s5, %s947_s1 }
  0x34   : > { %p610_p12 = pneg %p962_p11  ;;  %p615_p3 = scmp.lt.u32.totalorder %s613_s7, %s608_s6 }
  0x35   : > { %p617_p9 = scmp.lt.u32.totalorder %s608_s6, %s832_s5 }
  0x36   : > { %p611_p13 = pnand %p610_p12, %p609_p6  ;;  %p616_p8 = por %p615_p3, %p614_p7 }
  0x38   : > { %p612_p1 = pneg %p611_p13  ;;  %p618_p10 = por %p617_p9, %p616_p8 }
  0x3a   : > { %p619_p2 = pnand %p618_p10, %p612_p1 }
  0x3c   : > { %622 = shalt.err (!%p619_p2)
}
  0x3d   : > { %s623_s27 = scalar_lea.vmem %s834_s30, 2048  ;;  %s711_s16 = smov [#allocation5]  }
  0x3e   : > { %p624_p4 = scmp.ne.s32.totalorder %s834_s30, %s623_s27  ;;  %s628_s17 = sshll.u32 %s711_s16, 4  ;;  %s629_s17 = int_to_ptr.vmem [resolvable:$false] %s628_s17 }
  0x3f   : > { %s630_s19 = scalar_lea.vmem %s629_s17, 4096  ;;  %p631_p6 = scmp.lt.s32.totalorder %s834_s30, %s629_s17 }
  0x40   : > { %p626_p5 = pnand %p624_p4, %p610_p12  ;;  %p632_p13 = scmp.lt.s32.totalorder %s630_s19, %s623_s27 }
  0x42   : > { %p627_p0 = pneg %p626_p5  ;;  %p633_p7 = por %p632_p13, %p631_p6 }
  0x44   : > { %p634_p3 = pnand %p633_p7, %p627_p0 }
  0x46   : > { %637 = shalt.err (!%p634_p3)
}
  0x47   : > { %s712_s24 = smov 128   ;;  %s713_s3 = smov 64  }
  0x48   : > { %s714_s4 = smov 4   ;;  %p963_p12 = scmp.ne.s32.totalorder %s958_s23, 0 }
  0x49   : > { %517 = dma.hbm_to_vmem [thread:$0]  (!%p962_p11), %s832_s5, 2048, %s834_s30, %s836_s26, %s712_s24, %s713_s3, %s714_s4  }
  0x4a   : > { %143 = sbr.rel (%p963_p12) target bundleno = 348 (0x15c), region = 28  ;;  %p964_p1 = scmp.eq.s32.totalorder (!%p963_p12), %s752_s13, 0 }
  0x51   : > { %683 = dma.done.wait (%p964_p1), [#allocation3], 128   ;;  %p965_p8 = pmov %p964_p1 }
  0x52   : > { %s871_s6 = sand.u32 1, %s700_s10   ;;  %p966_p11 = scmp.ne.s32.totalorder %s955_s20, 0 }
  0x53   : > { %685 = vsyncadd (%p965_p8), [#allocation3], 4294967168  ;;  %s456_s25 = sshll.u32 %s871_s6, 7  ;;  %s150_s29 = scalar_lea.sflag [#allocation6], %s871_s6 }
  0x54   : > { %s875_s7 = scalar_lea.vmem [#allocation5], %s456_s25 }
  0x55   : > { %687 = dma.done.wait (%p966_p11), %s150_s29, 2048  }
  0x56   : > { %689 = vsyncadd (%p966_p11), %s150_s29, 4294965248  ;;  %v562_v0 = vld [vmem:[%s875_s7 + $0x40] sm:$0xff]   ;;  %v564_v2 = vld [vmem:[%s875_s7 + $0x48] sm:$0xff]   ;;  %s457_s20 = sshll.u32 %s871_s6, 3  ;;  %s477_s23 = sshll.u32 %s752_s13, 7 }
  0x57   : > { %v563_v1 = vld [vmem:[%s875_s7] sm:$0xff]   ;;  %480 = vmatprep.subr.bf16.mxu0 %v562_v0  ;;  %v565_v3 = vld [vmem:[%s875_s7 + $0x8] sm:$0xff]   ;;  %v566_v4 = vld [vmem:[%s875_s7 + $0x50] sm:$0xff]   ;;  %s173_s28 = scalar_lea.vmem [#allocation7], %s457_s20  ;;  %s902_s8 = scalar_lea.hbm %s948_s2, %s477_s23 }
  0x58   : > { %481 = vmatpush3.bf16.msra.mxu0 %v563_v1  ;;  %v567_v5 = vld [vmem:[%s875_s7 + $0x10] sm:$0xff]   ;;  %v568_v6 = vld [vmem:[%s875_s7 + $0x58] sm:$0xff]   ;;  %v570_v8 = vld [vmem:[%s875_s7 + $0x60] sm:$0xff]   ;;  %s366_s30 = sshll.u32 %s173_s28, 4  ;;  %s353_s14 = scalar_lea.sflag [#allocation4], %s871_s6  ;;  %s904_s30 = int_to_ptr.vmem [resolvable:$true] %s366_s30 }
  0x59   : > { %482 = vmatprep.subr.bf16.mxu0 %v564_v2  ;;  %v569_v7 = vld [vmem:[%s875_s7 + $0x18] sm:$0xff]   ;;  %v571_v9 = vld [vmem:[%s875_s7 + $0x20] sm:$0xff]   ;;  %v572_v10 = vld [vmem:[%s875_s7 + $0x68] sm:$0xff]   ;;  %s638_s13 = scalar_lea.vmem %s904_s30, 128  ;;  %p967_p10 = scmp.ne.s32.totalorder %s956_s21, 0 }
  0x5a   : > { %v175_v11 = vld [vmem:[#allocation2] sm:$0xff]  ;;  %v573_v13 = vld [vmem:[%s875_s7 + $0x28] sm:$0xff]   ;;  %v574_v14 = vld [vmem:[%s875_s7 + $0x70] sm:$0xff]   ;;  %p639_p9 = scmp.ne.s32.totalorder %s904_s30, %s638_s13  ;;  %s715_s27 = smov [#allocation7]  }
  0x5b   : > { %v459_v12 = vcombine.high %v175_v11, %v175_v11  ;;  %v575_v15 = vld [vmem:[%s875_s7 + $0x30] sm:$0xff]   ;;  %v576_v16 = vld [vmem:[%s875_s7 + $0x78] sm:$0xff]   ;;  %v458_v18 = vcombine.low %v175_v11, %v175_v11  ;;  %s642_s16 = sshll.u32 %s715_s27, 4  ;;  %s643_s16 = int_to_ptr.vmem [resolvable:$false] %s642_s16 }
  0x5c   : > { %483 = vmatpush3.bf16.msra.mxu0 %v565_v3  ;;  %v577_v17 = vld [vmem:[%s875_s7 + $0x38] sm:$0xff]   ;;  %p640_p2 = pnand %p639_p9, %p967_p10  ;;  %s644_s17 = scalar_lea.vmem %s643_s16, 256 }
  0x5d   : > { %484 = vmatprep.subr.bf16.mxu0 %v566_v4  ;;  %343 = vmatprep.mubr.bf16.mxu0 %v459_v12  ;;  %p645_p5 = scmp.lt.s32.totalorder %s904_s30, %s643_s16  ;;  %p646_p0 = scmp.lt.s32.totalorder %s644_s17, %s638_s13 }
  0x5e   : > { %p641_p4 = pneg %p640_p2 }
  0x5f   : > { %p647_p6 = por %p646_p0, %p645_p5 }
  0x60   : > { %485 = vmatpush3.bf16.msra.mxu0 %v567_v5 }
  0x61   : > { %486 = vmatprep.subr.bf16.mxu0 %v568_v6  ;;  %p648_p13 = pnand %p647_p6, %p641_p4 }
  0x64   : > { %487 = vmatpush3.bf16.msra.mxu0 %v569_v7 }
  0x65   : > { %488 = vmatprep.subr.bf16.mxu0 %v570_v8 }
  0x68   : > { %489 = vmatpush3.bf16.msra.mxu0 %v571_v9 }
  0x69   : > { %490 = vmatprep.subr.bf16.mxu0 %v572_v10 }
  0x6c   : > { %491 = vmatpush3.bf16.msra.mxu0 %v573_v13 }
  0x6d   : > { %492 = vmatprep.subr.bf16.mxu0 %v574_v14 }
  0x70   : > { %493 = vmatpush3.bf16.msra.mxu0 %v575_v15 }
  0x71   : > { %494 = vmatprep.subr.bf16.mxu0 %v576_v16 }
  0x74   : > { %495 = vmatpush3.bf16.msra.mxu0 %v577_v17 }
  0x77   : > { %344 = vmatmul.mubr.bf16.vlgmr.msra.gmra.mrb[0].mxu0 %v458_v18 }
 0x14a   : > { %v496_v19 = vpop.f32.mrb[0].mxu0 }
 0x14b   : > { %v497_v20 = vpop.f32.mrb[1].mxu0 }
 0x14c   : > { %v498_v21 = vadd.f32 %v497_v20, %v496_v19  ;;  %v499_v22 = vpop.f32.mrb[2].mxu0 }
 0x14d   : > { %v500_v23 = vpop.f32.mrb[3].mxu0 }
 0x14e   : > { %351 = vst [vmem:[%s173_s28] sm:$0xff] %v498_v21 }
 0x14f   : > { %651 = shalt.err (!%p648_p13)
}
 0x150   : > { %s652_s19 = scalar_lea.hbm %s902_s8, 128  ;;  %s656_s4 = scalar_lea.hbm %s948_s2, 256 }
 0x151   : > { %p653_p7 = scmp.ne.s32.totalorder %s902_s8, %s652_s19  ;;  %p657_p1 = scmp.lt.u32.totalorder %s902_s8, %s948_s2 }
 0x152   : > { %p658_p8 = scmp.lt.u32.totalorder %s656_s4, %s652_s19  ;;  %p660_p9 = scmp.lt.u32.totalorder %s652_s19, %s902_s8 }
 0x153   : > { %p654_p3 = pnand %p653_p7, %p967_p10 }
 0x154   : > { %p659_p11 = por %p658_p8, %p657_p1 }
 0x155   : > { %p655_p12 = pneg %p654_p3 }
 0x156   : > { %p661_p2 = por %p660_p9, %p659_p11 }
 0x158   : > { %p662_p4 = pnand %p661_p2, %p655_p12 }
 0x15a   : > { %665 = shalt.err (!%p662_p4)
}
 0x15b   : > { %508 = dma.vmem_to_hbm [thread:$0]  (%p967_p10), %s904_s30, 128, %s902_s8, %s353_s14  }
 0x15c PF: > { %s378_s29 = sand.u32 1, %s696_s9   ;;  %p968_p5 = scmp.ne.s32.totalorder %s957_s22, 0 }
 0x15d   : > { %p969_p0 = scmp.ge.s32.totalorder %s708_s12, 2  ;;  %s379_s7 = scalar_lea.sflag [#allocation4], %s378_s29 }
 0x15f   : > { %p519_p6 = pnand %p969_p0, %p968_p5 }
 0x161   : > { %691 = dma.done.wait (!%p519_p6), %s379_s7, 128  }
 0x162   : > { %693 = vsyncadd (!%p519_p6), %s379_s7, 4294967168  ;;  %p16_p13 = scmp.ge.s32.totalorder %s756_s15, 4   ;;  %s970_s9 = smov %s700_s10 }
 0x163   : > { %s971_s10 = smov %s704_s11  ;;  %s972_s11 = smov %s768_s18 }
 0x164   : > { %s973_s12 = smov %s756_s15  ;;  %18 = sbr.rel (!%p16_p13) target bundleno = 6 (0x6), region = 78 }
 0x16b   :  { %384 = vsyncpa [#allocation3], 1 }
 0x16c   :  { %386 = vsyncpa [#allocation3 + $0x1], 1 }
 0x16d   :  { %387 = vsyncpa [#allocation6], 1 }
 0x16e   :  { %389 = vsyncpa [#allocation6 + $0x1], 1 }
 0x16f   :  { %390 = vsyncpa [#allocation4], 1 }
 0x170   :  { %392 = vsyncpa [#allocation4 + $0x1], 1 }

</bundles_post_ra>
